<compile_context>
chip_gen: v7x
topology: tpu7x:2x2x1
jax: 0.10.0
libtpu: 0.0.40
codegen_flags: <defaults>
</compile_context>

<pallas_src>
import functools

import jax
import jax.numpy as jnp
from jax.experimental import pallas as pl
from jax.experimental.pallas import tpu as pltpu


def _round_up(v, m):
    return ((v + m - 1) // m) * m


def _lstm_block_kernel(x_ref, wih_ref, whh_ref, b_ref, wlin_ref, blin_ref,
                       y_ref, h_scr, c_scr, xw_scr, hs_scr,
                       *, hidden_size, time_block, out_size, in_size, skip,
                       unroll):
    H, TB, O, I = hidden_size, time_block, out_size, in_size

    # hidden == None in the PyTorch module -> zero initial (h, c) for every
    # batch block.  Time is the innermost (sequential) grid axis, so
    # program_id(1) == 0 marks the start of each batch block's sequence.
    @pl.when(pl.program_id(1) == 0)
    def _():
        h_scr[...] = jnp.zeros_like(h_scr)
        c_scr[...] = jnp.zeros_like(c_scr)

    x = x_ref[...]                                    # (TB, BBP, I)
    BBP = x.shape[1]

    # Input/bias contribution to the packed gates for the whole time block,
    # computed once -- it is off the serial h/c dependency chain.  For I == 1
    # this is a pure VPU broadcast multiply (no MXU round trip).
    if I == 1:
        xw = x * wih_ref[...]                         # (TB,BBP,1)*(1,4H)
    else:
        xw = jnp.dot(x.reshape(TB * BBP, I), wih_ref[...],
                     preferred_element_type=jnp.float32).reshape(TB, BBP, 4 * H)
    xw_scr[...] = xw + b_ref[...]

    whh = whh_ref[...]                                # (H, 4H) loop invariant

    def step(t, carry):
        h, c = carry                                  # (BBP, H), live in vregs
        gates = xw_scr[t] + jnp.dot(h, whh, preferred_element_type=jnp.float32)
        # Gates are packed contiguously (i|f|g|o): one sigmoid and one tanh
        # over the full packed vreg cover all four gates (2 EUP passes/step),
        # then static lane slices pick out each gate.
        sg = jax.nn.sigmoid(gates)
        tg = jnp.tanh(gates)
        i_g = sg[:, 0:H]
        f_g = sg[:, H:2 * H]
        g_g = tg[:, 2 * H:3 * H]
        o_g = sg[:, 3 * H:4 * H]
        c_new = f_g * c + i_g * g_g
        h_new = o_g * jnp.tanh(c_new)
        hs_scr[t] = h_new
        return h_new, c_new

    h_fin, c_fin = jax.lax.fori_loop(0, TB, step, (h_scr[...], c_scr[...]),
                                     unroll=unroll)
    h_scr[...] = h_fin
    c_scr[...] = c_fin

    # Output projection + skip connection for the whole block, done once.
    hs = hs_scr[...]                                  # (TB, BBP, H)
    if O == 1:
        # N == 1 projection as VPU multiply + lane reduction (no MXU).
        y = jnp.sum(hs * wlin_ref[...], axis=-1) + blin_ref[...]   # (TB, BBP)
        if skip:
            # Skip channel taken from the x block already resident in VMEM.
            y = y + jnp.sum(x[:, :, 0:1], axis=-1)
        y_ref[...] = y
    else:
        y = jnp.dot(hs.reshape(TB * BBP, H), wlin_ref[...],
                    preferred_element_type=jnp.float32) + blin_ref[...]
        y = y.reshape(TB, BBP, O)
        if skip:
            y = y + x[:, :, 0:skip]
        y_ref[...] = y


def _vmem_bytes_estimate(tb, bbp, in_size, hidden, out_size):
    """Rough VMEM footprint (bytes) incl. (8,128) tile padding + double buffers."""
    lane = lambda n: _round_up(max(n, 1), 128)
    sub = lambda n: _round_up(max(n, 1), 8)
    G = 4 * hidden
    f32 = 4
    x_blk = 2 * tb * sub(bbp) * lane(in_size) * f32            # double-buffered
    if out_size == 1:
        y_blk = 2 * sub(tb) * lane(bbp) * f32
    else:
        y_blk = 2 * tb * sub(bbp) * lane(out_size) * f32
    weights = 2 * (sub(in_size) + sub(hidden) + sub(1)) * lane(G) * f32
    weights += 2 * sub(1) * (lane(hidden) + lane(out_size)) * f32
    scratch = (2 * sub(bbp) * lane(hidden)                     # h, c
               + tb * sub(bbp) * lane(G)                       # xw_scr
               + tb * sub(bbp) * lane(hidden)) * f32           # hs_scr
    return x_blk + y_blk + weights + scratch


def recnet_lstm_forward(x, params, *, hidden_size, skip=1, time_block=256,
                        vmem_budget_bytes=10 << 20):
    """x: (T, B, input_size) float32.  Returns (T, B, output_size)."""
    T, B, I = x.shape
    H = hidden_size
    O = params["wlin"].shape[0]
    G = 4 * H
    assert skip >= 0
    if skip > 0:
        # nn.Linear output + x[:, :, 0:skip] must broadcast (PyTorch semantics).
        assert skip == 1 or skip == O, "skip must be 1 or output_size"

    # Batch tiling: fill MXU rows (up to 128) before splitting batch into the
    # parallel grid axis (which feeds the 2nd TensorCore on v7x).
    BPfull = _round_up(B, 8)
    BBP = min(BPfull, 128)
    BPfull = _round_up(BPfull, BBP)
    n_bb = BPfull // BBP

    # Time tiling: largest block under the VMEM budget (per-step grid overhead
    # ~0.35us makes bigger blocks strictly better until the VMEM wall).
    TB = min(_round_up(T, 8), _round_up(time_block, 8))
    while TB > 8 and _vmem_bytes_estimate(TB, BBP, I, H, O) > vmem_budget_bytes:
        TB = _round_up(TB // 2, 8)
    TP = _round_up(T, TB)
    n_tb = TP // TB

    x = x.astype(jnp.float32)
    xp = jnp.zeros((TP, BPfull, I), jnp.float32).at[:T, :B, :].set(x)

    # Packed (contiguous) gate layout i|f|g|o along lanes; no per-gate padding.
    wih_t = params["wih"].T.astype(jnp.float32)                 # (I, 4H)
    whh_t = params["whh"].T.astype(jnp.float32)                 # (H, 4H)
    bias = (params["bih"] + params["bhh"]).reshape(1, G).astype(jnp.float32)

    if O == 1:
        wlin_in = params["wlin"].reshape(1, H).astype(jnp.float32)
        blin_in = params["blin"].reshape(1, 1).astype(jnp.float32)
        out_shape = jax.ShapeDtypeStruct((TP, BPfull), jnp.float32)
        out_spec = pl.BlockSpec((TB, BBP), lambda bb, tb: (tb, bb))
    else:
        wlin_in = params["wlin"].T.astype(jnp.float32)          # (H, O)
        blin_in = params["blin"].reshape(1, O).astype(jnp.float32)
        out_shape = jax.ShapeDtypeStruct((TP, BPfull, O), jnp.float32)
        out_spec = pl.BlockSpec((TB, BBP, O), lambda bb, tb: (tb, bb, 0))

    in_specs = [
        pl.BlockSpec((TB, BBP, I), lambda bb, tb: (tb, bb, 0)),   # x (gates + skip)
        pl.BlockSpec((I, G), lambda bb, tb: (0, 0)),              # W_ih^T packed
        pl.BlockSpec((H, G), lambda bb, tb: (0, 0)),              # W_hh^T packed
        pl.BlockSpec((1, G), lambda bb, tb: (0, 0)),              # b_ih + b_hh
        pl.BlockSpec(wlin_in.shape, lambda bb, tb: (0, 0)),       # W_lin
        pl.BlockSpec(blin_in.shape, lambda bb, tb: (0, 0)),       # b_lin
    ]

    kernel = functools.partial(
        _lstm_block_kernel, hidden_size=H, time_block=TB, out_size=O,
        in_size=I, skip=skip, unroll=(TB if TB <= 16 else 8))

    grid_spec = pltpu.PrefetchScalarGridSpec(
        num_scalar_prefetch=0,
        grid=(n_bb, n_tb),          # (parallel batch blocks, sequential time)
        in_specs=in_specs,
        out_specs=out_spec,
        scratch_shapes=[
            pltpu.VMEM((BBP, H), jnp.float32),        # h carried across time blocks
            pltpu.VMEM((BBP, H), jnp.float32),        # c carried across time blocks
            pltpu.VMEM((TB, BBP, G), jnp.float32),    # x/bias gate contribution
            pltpu.VMEM((TB, BBP, H), jnp.float32),    # h history for projection
        ],
    )

    est = _vmem_bytes_estimate(TB, BBP, I, H, O)
    vmem_limit = int(min(max(32 << 20, 2 * est), 48 << 20))

    out = pl.pallas_call(
        kernel,
        out_shape=out_shape,
        grid_spec=grid_spec,
        compiler_params=pltpu.CompilerParams(
            dimension_semantics=("parallel", "arbitrary"),
            vmem_limit_bytes=vmem_limit),
    )(xp, wih_t, whh_t, bias, wlin_in, blin_in)

    if O == 1:
        return out[:T, :B].reshape(T, B, 1)
    return out[:T, :B, :]


def reference_forward(x, params, *, hidden_size, skip):
    """Pure-JAX reference matching torch.nn.LSTM + nn.Linear + skip."""
    T, B, I = x.shape
    H = hidden_size
    wih, whh = params["wih"], params["whh"]
    bih, bhh = params["bih"], params["bhh"]

    def step(carry, xt):
        h, c = carry
        gates = xt @ wih.T + h @ whh.T + bih + bhh
        i = jax.nn.sigmoid(gates[:, 0:H])
        f = jax.nn.sigmoid(gates[:, H:2 * H])
        g = jnp.tanh(gates[:, 2 * H:3 * H])
        o = jax.nn.sigmoid(gates[:, 3 * H:4 * H])
        c = f * c + i * g
        h = o * jnp.tanh(c)
        return (h, c), h

    init = (jnp.zeros((B, H), jnp.float32), jnp.zeros((B, H), jnp.float32))
    _, hs = jax.lax.scan(step, init, x)
    y = hs @ params["wlin"].T + params["blin"]
    if skip > 0:
        y = y + x[:, :, 0:skip]
    return y


def init_params(key, input_size, hidden_size, output_size):
    """Deterministic init mimicking PyTorch's uniform(-1/sqrt(H), 1/sqrt(H))."""
    H, I, O = hidden_size, input_size, output_size
    k = 1.0 / jnp.sqrt(jnp.asarray(H, jnp.float32))
    keys = jax.random.split(key, 6)
    u = lambda kk, shape: jax.random.uniform(kk, shape, jnp.float32, -k, k)
    return {
        "wih": u(keys[0], (4 * H, I)),
        "whh": u(keys[1], (4 * H, H)),
        "bih": u(keys[2], (4 * H,)),
        "bhh": u(keys[3], (4 * H,)),
        "wlin": u(keys[4], (O, H)),
        "blin": u(keys[5], (O,)),
    }


if __name__ == "__main__":
    # Canonical RecNet/BasicRNNBlock config: LSTM, input_size=1, output_size=1,
    # hidden_size=32, skip=1; sequence layout (T, B, I) like nn.LSTM's default.
    T, B, I, H, O, SKIP = 8, 2, 1, 32, 1, 1

    key = jax.random.PRNGKey(0)
    pkey, xkey = jax.random.split(key)
    params = init_params(pkey, I, H, O)
    x = jax.random.normal(xkey, (T, B, I), jnp.float32)

    y = recnet_lstm_forward(x, params, hidden_size=H, skip=SKIP)
    y = jax.block_until_ready(y)

    y_ref = reference_forward(x, params, hidden_size=H, skip=SKIP)
    assert y.shape == (T, B, O)
    assert jnp.allclose(y, y_ref, rtol=1e-4, atol=1e-4), "mismatch vs reference"

    print("KERNEL_OK")
</pallas_src>

<mosaic_0001>
module attributes {stable_mosaic.version = 11 : i64} {
  func.func @_lstm_block_kernel(%arg0: i32, %arg1: i32, %arg2: memref<8x8x1xf32, #tpu.memory_space<vmem>>, %arg3: memref<1x128xf32, #tpu.memory_space<vmem>>, %arg4: memref<32x128xf32, #tpu.memory_space<vmem>>, %arg5: memref<1x128xf32, #tpu.memory_space<vmem>>, %arg6: memref<1x32xf32, #tpu.memory_space<vmem>>, %arg7: memref<1x1xf32, #tpu.memory_space<vmem>>, %arg8: memref<8x8xf32, #tpu.memory_space<vmem>>, %arg9: memref<8x32xf32, #tpu.memory_space<vmem>>, %arg10: memref<8x32xf32, #tpu.memory_space<vmem>>, %arg11: memref<8x8x128xf32, #tpu.memory_space<vmem>>, %arg12: memref<8x8x32xf32, #tpu.memory_space<vmem>>) attributes {dimension_semantics = [#tpu.dimension_semantics<parallel>, #tpu.dimension_semantics<arbitrary>], iteration_bounds = array<i64: 1, 1>, scalar_prefetch = 0 : i64, scratch_operands = 4 : i64, tpu.core_type = #tpu.core_type<tc>, window_params = [{transform_indices = @transform_0, window_bounds = array<i64: 8, 8, 1>}, {pipeline_mode = #tpu.pipeline_mode<synchronous>, transform_indices = @transform_1, window_bounds = array<i64: 1, 128>}, {pipeline_mode = #tpu.pipeline_mode<synchronous>, transform_indices = @transform_2, window_bounds = array<i64: 32, 128>}, {pipeline_mode = #tpu.pipeline_mode<synchronous>, transform_indices = @transform_3, window_bounds = array<i64: 1, 128>}, {pipeline_mode = #tpu.pipeline_mode<synchronous>, transform_indices = @transform_4, window_bounds = array<i64: 1, 32>}, {pipeline_mode = #tpu.pipeline_mode<synchronous>, transform_indices = @transform_5, window_bounds = array<i64: 1, 1>}, {transform_indices = @transform_6, window_bounds = array<i64: 8, 8>}]} {
    %c0_i32 = arith.constant 0 : i32
    %0 = arith.cmpi eq, %arg1, %c0_i32 : i32
    %1 = arith.extui %0 : i1 to i32
    %c0_i32_0 = arith.constant 0 : i32
    %2 = arith.cmpi ne, %1, %c0_i32_0 : i32
    scf.if %2 {
      %cst_79 = arith.constant 0.000000e+00 : f32
      %223 = vector.broadcast %cst_79 : f32 to vector<8x32xf32>
      %c0_80 = arith.constant 0 : index
      %c0_81 = arith.constant 0 : index
      %224 = vector.load %arg9[%c0_80, %c0_81] : memref<8x32xf32, #tpu.memory_space<vmem>>, vector<8x32xf32>
      tpu.vector_store %arg9[%c0_80, %c0_81], %223 {strides = array<i32>} : memref<8x32xf32, #tpu.memory_space<vmem>>, vector<8x32xf32>,
      %cst_82 = arith.constant 0.000000e+00 : f32
      %225 = vector.broadcast %cst_82 : f32 to vector<8x32xf32>
      %c0_83 = arith.constant 0 : index
      %c0_84 = arith.constant 0 : index
      %226 = vector.load %arg10[%c0_83, %c0_84] : memref<8x32xf32, #tpu.memory_space<vmem>>, vector<8x32xf32>
      tpu.vector_store %arg10[%c0_83, %c0_84], %225 {strides = array<i32>} : memref<8x32xf32, #tpu.memory_space<vmem>>, vector<8x32xf32>,
    } else {
    }
    %c0 = arith.constant 0 : index
    %c0_1 = arith.constant 0 : index
    %c0_2 = arith.constant 0 : index
    %3 = vector.load %arg2[%c0, %c0_1, %c0_2] : memref<8x8x1xf32, #tpu.memory_space<vmem>>, vector<8x8x1xf32>
    %c0_3 = arith.constant 0 : index
    %c0_4 = arith.constant 0 : index
    %4 = vector.load %arg3[%c0_3, %c0_4] : memref<1x128xf32, #tpu.memory_space<vmem>>, vector<1x128xf32>
    %5 = vector.shape_cast %4 : vector<1x128xf32> to vector<1x1x128xf32>
    %6 = vector.broadcast %3 : vector<8x8x1xf32> to vector<8x8x128xf32>
    %7 = vector.broadcast %5 : vector<1x1x128xf32> to vector<8x8x128xf32>
    %8 = arith.mulf %6, %7 : vector<8x8x128xf32>
    %c0_5 = arith.constant 0 : index
    %c0_6 = arith.constant 0 : index
    %9 = vector.load %arg5[%c0_5, %c0_6] : memref<1x128xf32, #tpu.memory_space<vmem>>, vector<1x128xf32>
    %10 = vector.shape_cast %9 : vector<1x128xf32> to vector<1x1x128xf32>
    %11 = vector.broadcast %10 : vector<1x1x128xf32> to vector<8x8x128xf32>
    %12 = arith.addf %8, %11 : vector<8x8x128xf32>
    %c0_7 = arith.constant 0 : index
    %c0_8 = arith.constant 0 : index
    %c0_9 = arith.constant 0 : index
    %13 = vector.load %arg11[%c0_7, %c0_8, %c0_9] : memref<8x8x128xf32, #tpu.memory_space<vmem>>, vector<8x8x128xf32>
    tpu.vector_store %arg11[%c0_7, %c0_8, %c0_9], %12 {strides = array<i32>} : memref<8x8x128xf32, #tpu.memory_space<vmem>>, vector<8x8x128xf32>,
    %c0_10 = arith.constant 0 : index
    %c0_11 = arith.constant 0 : index
    %14 = vector.load %arg4[%c0_10, %c0_11] : memref<32x128xf32, #tpu.memory_space<vmem>>, vector<32x128xf32>
    %c0_12 = arith.constant 0 : index
    %c0_13 = arith.constant 0 : index
    %15 = vector.load %arg9[%c0_12, %c0_13] : memref<8x32xf32, #tpu.memory_space<vmem>>, vector<8x32xf32>
    %c0_14 = arith.constant 0 : index
    %c0_15 = arith.constant 0 : index
    %16 = vector.load %arg10[%c0_14, %c0_15] : memref<8x32xf32, #tpu.memory_space<vmem>>, vector<8x32xf32>
    %c0_i32_16 = arith.constant 0 : i32
    %17 = arith.index_cast %c0_i32_16 : i32 to index
    %c0_17 = arith.constant 0 : index
    %c0_18 = arith.constant 0 : index
    %18 = vector.load %arg11[%17, %c0_17, %c0_18] : memref<8x8x128xf32, #tpu.memory_space<vmem>>, vector<1x8x128xf32>
    %19 = vector.shape_cast %18 : vector<1x8x128xf32> to vector<8x128xf32>
    %cst = arith.constant dense<0.000000e+00> : vector<8x128xf32>
    %20 = tpu.matmul %15, %14, %cst {dimension_numbers = #tpu.dot_dimension_numbers<[1], [0], [0], [1], [0, 0, 1, 1], [], []>} : vector<8x32xf32>, vector<32x128xf32>, vector<8x128xf32> -> vector<8x128xf32>
    %21 = arith.addf %19, %20 : vector<8x128xf32>
    %22 = arith.negf %21 : vector<8x128xf32>
    %23 = math.exp %22 : vector<8x128xf32>
    %cst_19 = arith.constant 1.000000e+00 : f32
    %24 = vector.broadcast %cst_19 : f32 to vector<8x128xf32>
    %25 = arith.addf %24, %23 : vector<8x128xf32>
    %26 = arith.divf %24, %25 : vector<8x128xf32>
    %27 = math.tanh %21 : vector<8x128xf32>
    %28 = vector.extract_strided_slice %26 {offsets = [0, 0], sizes = [8, 32], strides = [1, 1]} : vector<8x128xf32> to vector<8x32xf32>
    %29 = vector.extract_strided_slice %26 {offsets = [0, 32], sizes = [8, 32], strides = [1, 1]} : vector<8x128xf32> to vector<8x32xf32>
    %30 = vector.extract_strided_slice %27 {offsets = [0, 64], sizes = [8, 32], strides = [1, 1]} : vector<8x128xf32> to vector<8x32xf32>
    %31 = vector.extract_strided_slice %26 {offsets = [0, 96], sizes = [8, 32], strides = [1, 1]} : vector<8x128xf32> to vector<8x32xf32>
    %32 = arith.mulf %29, %16 : vector<8x32xf32>
    %33 = arith.mulf %28, %30 : vector<8x32xf32>
    %34 = arith.addf %32, %33 : vector<8x32xf32>
    %35 = math.tanh %34 : vector<8x32xf32>
    %36 = arith.mulf %31, %35 : vector<8x32xf32>
    %37 = arith.index_cast %c0_i32_16 : i32 to index
    %c0_20 = arith.constant 0 : index
    %c0_21 = arith.constant 0 : index
    %38 = vector.load %arg12[%37, %c0_20, %c0_21] : memref<8x8x32xf32, #tpu.memory_space<vmem>>, vector<1x8x32xf32>
    %39 = vector.shape_cast %38 : vector<1x8x32xf32> to vector<8x32xf32>
    %40 = vector.shape_cast %36 : vector<8x32xf32> to vector<1x8x32xf32>
    tpu.vector_store %arg12[%37, %c0_20, %c0_21], %40 {strides = array<i32>} : memref<8x8x32xf32, #tpu.memory_space<vmem>>, vector<1x8x32xf32>,
    %c1_i32 = arith.constant 1 : i32
    %41 = arith.index_cast %c1_i32 : i32 to index
    %c0_22 = arith.constant 0 : index
    %c0_23 = arith.constant 0 : index
    %42 = vector.load %arg11[%41, %c0_22, %c0_23] : memref<8x8x128xf32, #tpu.memory_space<vmem>>, vector<1x8x128xf32>
    %43 = vector.shape_cast %42 : vector<1x8x128xf32> to vector<8x128xf32>
    %cst_24 = arith.constant dense<0.000000e+00> : vector<8x128xf32>
    %44 = tpu.matmul %36, %14, %cst_24 {dimension_numbers = #tpu.dot_dimension_numbers<[1], [0], [0], [1], [0, 0, 1, 1], [], []>} : vector<8x32xf32>, vector<32x128xf32>, vector<8x128xf32> -> vector<8x128xf32>
    %45 = arith.addf %43, %44 : vector<8x128xf32>
    %46 = arith.negf %45 : vector<8x128xf32>
    %47 = math.exp %46 : vector<8x128xf32>
    %cst_25 = arith.constant 1.000000e+00 : f32
    %48 = vector.broadcast %cst_25 : f32 to vector<8x128xf32>
    %49 = arith.addf %48, %47 : vector<8x128xf32>
    %50 = arith.divf %48, %49 : vector<8x128xf32>
    %51 = math.tanh %45 : vector<8x128xf32>
    %52 = vector.extract_strided_slice %50 {offsets = [0, 0], sizes = [8, 32], strides = [1, 1]} : vector<8x128xf32> to vector<8x32xf32>
    %53 = vector.extract_strided_slice %50 {offsets = [0, 32], sizes = [8, 32], strides = [1, 1]} : vector<8x128xf32> to vector<8x32xf32>
    %54 = vector.extract_strided_slice %51 {offsets = [0, 64], sizes = [8, 32], strides = [1, 1]} : vector<8x128xf32> to vector<8x32xf32>
    %55 = vector.extract_strided_slice %50 {offsets = [0, 96], sizes = [8, 32], strides = [1, 1]} : vector<8x128xf32> to vector<8x32xf32>
    %56 = arith.mulf %53, %34 : vector<8x32xf32>
    %57 = arith.mulf %52, %54 : vector<8x32xf32>
    %58 = arith.addf %56, %57 : vector<8x32xf32>
    %59 = math.tanh %58 : vector<8x32xf32>
    %60 = arith.mulf %55, %59 : vector<8x32xf32>
    %61 = arith.index_cast %c1_i32 : i32 to index
    %c0_26 = arith.constant 0 : index
    %c0_27 = arith.constant 0 : index
    %62 = vector.load %arg12[%61, %c0_26, %c0_27] : memref<8x8x32xf32, #tpu.memory_space<vmem>>, vector<1x8x32xf32>
    %63 = vector.shape_cast %62 : vector<1x8x32xf32> to vector<8x32xf32>
    %64 = vector.shape_cast %60 : vector<8x32xf32> to vector<1x8x32xf32>
    tpu.vector_store %arg12[%61, %c0_26, %c0_27], %64 {strides = array<i32>} : memref<8x8x32xf32, #tpu.memory_space<vmem>>, vector<1x8x32xf32>,
    %c2_i32 = arith.constant 2 : i32
    %65 = arith.index_cast %c2_i32 : i32 to index
    %c0_28 = arith.constant 0 : index
    %c0_29 = arith.constant 0 : index
    %66 = vector.load %arg11[%65, %c0_28, %c0_29] : memref<8x8x128xf32, #tpu.memory_space<vmem>>, vector<1x8x128xf32>
    %67 = vector.shape_cast %66 : vector<1x8x128xf32> to vector<8x128xf32>
    %cst_30 = arith.constant dense<0.000000e+00> : vector<8x128xf32>
    %68 = tpu.matmul %60, %14, %cst_30 {dimension_numbers = #tpu.dot_dimension_numbers<[1], [0], [0], [1], [0, 0, 1, 1], [], []>} : vector<8x32xf32>, vector<32x128xf32>, vector<8x128xf32> -> vector<8x128xf32>
    %69 = arith.addf %67, %68 : vector<8x128xf32>
    %70 = arith.negf %69 : vector<8x128xf32>
    %71 = math.exp %70 : vector<8x128xf32>
    %cst_31 = arith.constant 1.000000e+00 : f32
    %72 = vector.broadcast %cst_31 : f32 to vector<8x128xf32>
    %73 = arith.addf %72, %71 : vector<8x128xf32>
    %74 = arith.divf %72, %73 : vector<8x128xf32>
    %75 = math.tanh %69 : vector<8x128xf32>
    %76 = vector.extract_strided_slice %74 {offsets = [0, 0], sizes = [8, 32], strides = [1, 1]} : vector<8x128xf32> to vector<8x32xf32>
    %77 = vector.extract_strided_slice %74 {offsets = [0, 32], sizes = [8, 32], strides = [1, 1]} : vector<8x128xf32> to vector<8x32xf32>
    %78 = vector.extract_strided_slice %75 {offsets = [0, 64], sizes = [8, 32], strides = [1, 1]} : vector<8x128xf32> to vector<8x32xf32>
    %79 = vector.extract_strided_slice %74 {offsets = [0, 96], sizes = [8, 32], strides = [1, 1]} : vector<8x128xf32> to vector<8x32xf32>
    %80 = arith.mulf %77, %58 : vector<8x32xf32>
    %81 = arith.mulf %76, %78 : vector<8x32xf32>
    %82 = arith.addf %80, %81 : vector<8x32xf32>
    %83 = math.tanh %82 : vector<8x32xf32>
    %84 = arith.mulf %79, %83 : vector<8x32xf32>
    %85 = arith.index_cast %c2_i32 : i32 to index
    %c0_32 = arith.constant 0 : index
    %c0_33 = arith.constant 0 : index
    %86 = vector.load %arg12[%85, %c0_32, %c0_33] : memref<8x8x32xf32, #tpu.memory_space<vmem>>, vector<1x8x32xf32>
    %87 = vector.shape_cast %86 : vector<1x8x32xf32> to vector<8x32xf32>
    %88 = vector.shape_cast %84 : vector<8x32xf32> to vector<1x8x32xf32>
    tpu.vector_store %arg12[%85, %c0_32, %c0_33], %88 {strides = array<i32>} : memref<8x8x32xf32, #tpu.memory_space<vmem>>, vector<1x8x32xf32>,
    %c3_i32 = arith.constant 3 : i32
    %89 = arith.index_cast %c3_i32 : i32 to index
    %c0_34 = arith.constant 0 : index
    %c0_35 = arith.constant 0 : index
    %90 = vector.load %arg11[%89, %c0_34, %c0_35] : memref<8x8x128xf32, #tpu.memory_space<vmem>>, vector<1x8x128xf32>
    %91 = vector.shape_cast %90 : vector<1x8x128xf32> to vector<8x128xf32>
    %cst_36 = arith.constant dense<0.000000e+00> : vector<8x128xf32>
    %92 = tpu.matmul %84, %14, %cst_36 {dimension_numbers = #tpu.dot_dimension_numbers<[1], [0], [0], [1], [0, 0, 1, 1], [], []>} : vector<8x32xf32>, vector<32x128xf32>, vector<8x128xf32> -> vector<8x128xf32>
    %93 = arith.addf %91, %92 : vector<8x128xf32>
    %94 = arith.negf %93 : vector<8x128xf32>
    %95 = math.exp %94 : vector<8x128xf32>
    %cst_37 = arith.constant 1.000000e+00 : f32
    %96 = vector.broadcast %cst_37 : f32 to vector<8x128xf32>
    %97 = arith.addf %96, %95 : vector<8x128xf32>
    %98 = arith.divf %96, %97 : vector<8x128xf32>
    %99 = math.tanh %93 : vector<8x128xf32>
    %100 = vector.extract_strided_slice %98 {offsets = [0, 0], sizes = [8, 32], strides = [1, 1]} : vector<8x128xf32> to vector<8x32xf32>
    %101 = vector.extract_strided_slice %98 {offsets = [0, 32], sizes = [8, 32], strides = [1, 1]} : vector<8x128xf32> to vector<8x32xf32>
    %102 = vector.extract_strided_slice %99 {offsets = [0, 64], sizes = [8, 32], strides = [1, 1]} : vector<8x128xf32> to vector<8x32xf32>
    %103 = vector.extract_strided_slice %98 {offsets = [0, 96], sizes = [8, 32], strides = [1, 1]} : vector<8x128xf32> to vector<8x32xf32>
    %104 = arith.mulf %101, %82 : vector<8x32xf32>
    %105 = arith.mulf %100, %102 : vector<8x32xf32>
    %106 = arith.addf %104, %105 : vector<8x32xf32>
    %107 = math.tanh %106 : vector<8x32xf32>
    %108 = arith.mulf %103, %107 : vector<8x32xf32>
    %109 = arith.index_cast %c3_i32 : i32 to index
    %c0_38 = arith.constant 0 : index
    %c0_39 = arith.constant 0 : index
    %110 = vector.load %arg12[%109, %c0_38, %c0_39] : memref<8x8x32xf32, #tpu.memory_space<vmem>>, vector<1x8x32xf32>
    %111 = vector.shape_cast %110 : vector<1x8x32xf32> to vector<8x32xf32>
    %112 = vector.shape_cast %108 : vector<8x32xf32> to vector<1x8x32xf32>
    tpu.vector_store %arg12[%109, %c0_38, %c0_39], %112 {strides = array<i32>} : memref<8x8x32xf32, #tpu.memory_space<vmem>>, vector<1x8x32xf32>,
    %c4_i32 = arith.constant 4 : i32
    %113 = arith.index_cast %c4_i32 : i32 to index
    %c0_40 = arith.constant 0 : index
    %c0_41 = arith.constant 0 : index
    %114 = vector.load %arg11[%113, %c0_40, %c0_41] : memref<8x8x128xf32, #tpu.memory_space<vmem>>, vector<1x8x128xf32>
    %115 = vector.shape_cast %114 : vector<1x8x128xf32> to vector<8x128xf32>
    %cst_42 = arith.constant dense<0.000000e+00> : vector<8x128xf32>
    %116 = tpu.matmul %108, %14, %cst_42 {dimension_numbers = #tpu.dot_dimension_numbers<[1], [0], [0], [1], [0, 0, 1, 1], [], []>} : vector<8x32xf32>, vector<32x128xf32>, vector<8x128xf32> -> vector<8x128xf32>
    %117 = arith.addf %115, %116 : vector<8x128xf32>
    %118 = arith.negf %117 : vector<8x128xf32>
    %119 = math.exp %118 : vector<8x128xf32>
    %cst_43 = arith.constant 1.000000e+00 : f32
    %120 = vector.broadcast %cst_43 : f32 to vector<8x128xf32>
    %121 = arith.addf %120, %119 : vector<8x128xf32>
    %122 = arith.divf %120, %121 : vector<8x128xf32>
    %123 = math.tanh %117 : vector<8x128xf32>
    %124 = vector.extract_strided_slice %122 {offsets = [0, 0], sizes = [8, 32], strides = [1, 1]} : vector<8x128xf32> to vector<8x32xf32>
    %125 = vector.extract_strided_slice %122 {offsets = [0, 32], sizes = [8, 32], strides = [1, 1]} : vector<8x128xf32> to vector<8x32xf32>
    %126 = vector.extract_strided_slice %123 {offsets = [0, 64], sizes = [8, 32], strides = [1, 1]} : vector<8x128xf32> to vector<8x32xf32>
    %127 = vector.extract_strided_slice %122 {offsets = [0, 96], sizes = [8, 32], strides = [1, 1]} : vector<8x128xf32> to vector<8x32xf32>
    %128 = arith.mulf %125, %106 : vector<8x32xf32>
    %129 = arith.mulf %124, %126 : vector<8x32xf32>
    %130 = arith.addf %128, %129 : vector<8x32xf32>
    %131 = math.tanh %130 : vector<8x32xf32>
    %132 = arith.mulf %127, %131 : vector<8x32xf32>
    %133 = arith.index_cast %c4_i32 : i32 to index
    %c0_44 = arith.constant 0 : index
    %c0_45 = arith.constant 0 : index
    %134 = vector.load %arg12[%133, %c0_44, %c0_45] : memref<8x8x32xf32, #tpu.memory_space<vmem>>, vector<1x8x32xf32>
    %135 = vector.shape_cast %134 : vector<1x8x32xf32> to vector<8x32xf32>
    %136 = vector.shape_cast %132 : vector<8x32xf32> to vector<1x8x32xf32>
    tpu.vector_store %arg12[%133, %c0_44, %c0_45], %136 {strides = array<i32>} : memref<8x8x32xf32, #tpu.memory_space<vmem>>, vector<1x8x32xf32>,
    %c5_i32 = arith.constant 5 : i32
    %137 = arith.index_cast %c5_i32 : i32 to index
    %c0_46 = arith.constant 0 : index
    %c0_47 = arith.constant 0 : index
    %138 = vector.load %arg11[%137, %c0_46, %c0_47] : memref<8x8x128xf32, #tpu.memory_space<vmem>>, vector<1x8x128xf32>
    %139 = vector.shape_cast %138 : vector<1x8x128xf32> to vector<8x128xf32>
    %cst_48 = arith.constant dense<0.000000e+00> : vector<8x128xf32>
    %140 = tpu.matmul %132, %14, %cst_48 {dimension_numbers = #tpu.dot_dimension_numbers<[1], [0], [0], [1], [0, 0, 1, 1], [], []>} : vector<8x32xf32>, vector<32x128xf32>, vector<8x128xf32> -> vector<8x128xf32>
    %141 = arith.addf %139, %140 : vector<8x128xf32>
    %142 = arith.negf %141 : vector<8x128xf32>
    %143 = math.exp %142 : vector<8x128xf32>
    %cst_49 = arith.constant 1.000000e+00 : f32
    %144 = vector.broadcast %cst_49 : f32 to vector<8x128xf32>
    %145 = arith.addf %144, %143 : vector<8x128xf32>
    %146 = arith.divf %144, %145 : vector<8x128xf32>
    %147 = math.tanh %141 : vector<8x128xf32>
    %148 = vector.extract_strided_slice %146 {offsets = [0, 0], sizes = [8, 32], strides = [1, 1]} : vector<8x128xf32> to vector<8x32xf32>
    %149 = vector.extract_strided_slice %146 {offsets = [0, 32], sizes = [8, 32], strides = [1, 1]} : vector<8x128xf32> to vector<8x32xf32>
    %150 = vector.extract_strided_slice %147 {offsets = [0, 64], sizes = [8, 32], strides = [1, 1]} : vector<8x128xf32> to vector<8x32xf32>
    %151 = vector.extract_strided_slice %146 {offsets = [0, 96], sizes = [8, 32], strides = [1, 1]} : vector<8x128xf32> to vector<8x32xf32>
    %152 = arith.mulf %149, %130 : vector<8x32xf32>
    %153 = arith.mulf %148, %150 : vector<8x32xf32>
    %154 = arith.addf %152, %153 : vector<8x32xf32>
    %155 = math.tanh %154 : vector<8x32xf32>
    %156 = arith.mulf %151, %155 : vector<8x32xf32>
    %157 = arith.index_cast %c5_i32 : i32 to index
    %c0_50 = arith.constant 0 : index
    %c0_51 = arith.constant 0 : index
    %158 = vector.load %arg12[%157, %c0_50, %c0_51] : memref<8x8x32xf32, #tpu.memory_space<vmem>>, vector<1x8x32xf32>
    %159 = vector.shape_cast %158 : vector<1x8x32xf32> to vector<8x32xf32>
    %160 = vector.shape_cast %156 : vector<8x32xf32> to vector<1x8x32xf32>
    tpu.vector_store %arg12[%157, %c0_50, %c0_51], %160 {strides = array<i32>} : memref<8x8x32xf32, #tpu.memory_space<vmem>>, vector<1x8x32xf32>,
    %c6_i32 = arith.constant 6 : i32
    %161 = arith.index_cast %c6_i32 : i32 to index
    %c0_52 = arith.constant 0 : index
    %c0_53 = arith.constant 0 : index
    %162 = vector.load %arg11[%161, %c0_52, %c0_53] : memref<8x8x128xf32, #tpu.memory_space<vmem>>, vector<1x8x128xf32>
    %163 = vector.shape_cast %162 : vector<1x8x128xf32> to vector<8x128xf32>
    %cst_54 = arith.constant dense<0.000000e+00> : vector<8x128xf32>
    %164 = tpu.matmul %156, %14, %cst_54 {dimension_numbers = #tpu.dot_dimension_numbers<[1], [0], [0], [1], [0, 0, 1, 1], [], []>} : vector<8x32xf32>, vector<32x128xf32>, vector<8x128xf32> -> vector<8x128xf32>
    %165 = arith.addf %163, %164 : vector<8x128xf32>
    %166 = arith.negf %165 : vector<8x128xf32>
    %167 = math.exp %166 : vector<8x128xf32>
    %cst_55 = arith.constant 1.000000e+00 : f32
    %168 = vector.broadcast %cst_55 : f32 to vector<8x128xf32>
    %169 = arith.addf %168, %167 : vector<8x128xf32>
    %170 = arith.divf %168, %169 : vector<8x128xf32>
    %171 = math.tanh %165 : vector<8x128xf32>
    %172 = vector.extract_strided_slice %170 {offsets = [0, 0], sizes = [8, 32], strides = [1, 1]} : vector<8x128xf32> to vector<8x32xf32>
    %173 = vector.extract_strided_slice %170 {offsets = [0, 32], sizes = [8, 32], strides = [1, 1]} : vector<8x128xf32> to vector<8x32xf32>
    %174 = vector.extract_strided_slice %171 {offsets = [0, 64], sizes = [8, 32], strides = [1, 1]} : vector<8x128xf32> to vector<8x32xf32>
    %175 = vector.extract_strided_slice %170 {offsets = [0, 96], sizes = [8, 32], strides = [1, 1]} : vector<8x128xf32> to vector<8x32xf32>
    %176 = arith.mulf %173, %154 : vector<8x32xf32>
    %177 = arith.mulf %172, %174 : vector<8x32xf32>
    %178 = arith.addf %176, %177 : vector<8x32xf32>
    %179 = math.tanh %178 : vector<8x32xf32>
    %180 = arith.mulf %175, %179 : vector<8x32xf32>
    %181 = arith.index_cast %c6_i32 : i32 to index
    %c0_56 = arith.constant 0 : index
    %c0_57 = arith.constant 0 : index
    %182 = vector.load %arg12[%181, %c0_56, %c0_57] : memref<8x8x32xf32, #tpu.memory_space<vmem>>, vector<1x8x32xf32>
    %183 = vector.shape_cast %182 : vector<1x8x32xf32> to vector<8x32xf32>
    %184 = vector.shape_cast %180 : vector<8x32xf32> to vector<1x8x32xf32>
    tpu.vector_store %arg12[%181, %c0_56, %c0_57], %184 {strides = array<i32>} : memref<8x8x32xf32, #tpu.memory_space<vmem>>, vector<1x8x32xf32>,
    %c7_i32 = arith.constant 7 : i32
    %185 = arith.index_cast %c7_i32 : i32 to index
    %c0_58 = arith.constant 0 : index
    %c0_59 = arith.constant 0 : index
    %186 = vector.load %arg11[%185, %c0_58, %c0_59] : memref<8x8x128xf32, #tpu.memory_space<vmem>>, vector<1x8x128xf32>
    %187 = vector.shape_cast %186 : vector<1x8x128xf32> to vector<8x128xf32>
    %cst_60 = arith.constant dense<0.000000e+00> : vector<8x128xf32>
    %188 = tpu.matmul %180, %14, %cst_60 {dimension_numbers = #tpu.dot_dimension_numbers<[1], [0], [0], [1], [0, 0, 1, 1], [], []>} : vector<8x32xf32>, vector<32x128xf32>, vector<8x128xf32> -> vector<8x128xf32>
    %189 = arith.addf %187, %188 : vector<8x128xf32>
    %190 = arith.negf %189 : vector<8x128xf32>
    %191 = math.exp %190 : vector<8x128xf32>
    %cst_61 = arith.constant 1.000000e+00 : f32
    %192 = vector.broadcast %cst_61 : f32 to vector<8x128xf32>
    %193 = arith.addf %192, %191 : vector<8x128xf32>
    %194 = arith.divf %192, %193 : vector<8x128xf32>
    %195 = math.tanh %189 : vector<8x128xf32>
    %196 = vector.extract_strided_slice %194 {offsets = [0, 0], sizes = [8, 32], strides = [1, 1]} : vector<8x128xf32> to vector<8x32xf32>
    %197 = vector.extract_strided_slice %194 {offsets = [0, 32], sizes = [8, 32], strides = [1, 1]} : vector<8x128xf32> to vector<8x32xf32>
    %198 = vector.extract_strided_slice %195 {offsets = [0, 64], sizes = [8, 32], strides = [1, 1]} : vector<8x128xf32> to vector<8x32xf32>
    %199 = vector.extract_strided_slice %194 {offsets = [0, 96], sizes = [8, 32], strides = [1, 1]} : vector<8x128xf32> to vector<8x32xf32>
    %200 = arith.mulf %197, %178 : vector<8x32xf32>
    %201 = arith.mulf %196, %198 : vector<8x32xf32>
    %202 = arith.addf %200, %201 : vector<8x32xf32>
    %203 = math.tanh %202 : vector<8x32xf32>
    %204 = arith.mulf %199, %203 : vector<8x32xf32>
    %205 = arith.index_cast %c7_i32 : i32 to index
    %c0_62 = arith.constant 0 : index
    %c0_63 = arith.constant 0 : index
    %206 = vector.load %arg12[%205, %c0_62, %c0_63] : memref<8x8x32xf32, #tpu.memory_space<vmem>>, vector<1x8x32xf32>
    %207 = vector.shape_cast %206 : vector<1x8x32xf32> to vector<8x32xf32>
    %208 = vector.shape_cast %204 : vector<8x32xf32> to vector<1x8x32xf32>
    tpu.vector_store %arg12[%205, %c0_62, %c0_63], %208 {strides = array<i32>} : memref<8x8x32xf32, #tpu.memory_space<vmem>>, vector<1x8x32xf32>,
    %c8_i32 = arith.constant 8 : i32
    %c0_64 = arith.constant 0 : index
    %c0_65 = arith.constant 0 : index
    %209 = vector.load %arg9[%c0_64, %c0_65] : memref<8x32xf32, #tpu.memory_space<vmem>>, vector<8x32xf32>
    tpu.vector_store %arg9[%c0_64, %c0_65], %204 {strides = array<i32>} : memref<8x32xf32, #tpu.memory_space<vmem>>, vector<8x32xf32>,
    %c0_66 = arith.constant 0 : index
    %c0_67 = arith.constant 0 : index
    %210 = vector.load %arg10[%c0_66, %c0_67] : memref<8x32xf32, #tpu.memory_space<vmem>>, vector<8x32xf32>
    tpu.vector_store %arg10[%c0_66, %c0_67], %202 {strides = array<i32>} : memref<8x32xf32, #tpu.memory_space<vmem>>, vector<8x32xf32>,
    %c0_68 = arith.constant 0 : index
    %c0_69 = arith.constant 0 : index
    %c0_70 = arith.constant 0 : index
    %211 = vector.load %arg12[%c0_68, %c0_69, %c0_70] : memref<8x8x32xf32, #tpu.memory_space<vmem>>, vector<8x8x32xf32>
    %c0_71 = arith.constant 0 : index
    %c0_72 = arith.constant 0 : index
    %212 = vector.load %arg6[%c0_71, %c0_72] : memref<1x32xf32, #tpu.memory_space<vmem>>, vector<1x32xf32>
    %213 = vector.shape_cast %212 : vector<1x32xf32> to vector<1x1x32xf32>
    %214 = vector.broadcast %213 : vector<1x1x32xf32> to vector<8x8x32xf32>
    %215 = arith.mulf %211, %214 : vector<8x8x32xf32>
    %cst_73 = arith.constant dense<0.000000e+00> : vector<8x8xf32>
    %216 = vector.multi_reduction <add>, %215, %cst_73 [2] : vector<8x8x32xf32> to vector<8x8xf32>
    %c0_74 = arith.constant 0 : index
    %c0_75 = arith.constant 0 : index
    %217 = vector.load %arg7[%c0_74, %c0_75] : memref<1x1xf32, #tpu.memory_space<vmem>>, vector<1x1xf32>
    %218 = vector.broadcast %217 : vector<1x1xf32> to vector<8x8xf32>
    %219 = arith.addf %216, %218 : vector<8x8xf32>
    %cst_76 = arith.constant dense<0.000000e+00> : vector<8x8xf32>
    %220 = vector.multi_reduction <add>, %3, %cst_76 [2] : vector<8x8x1xf32> to vector<8x8xf32>
    %221 = arith.addf %219, %220 : vector<8x8xf32>
    %c0_77 = arith.constant 0 : index
    %c0_78 = arith.constant 0 : index
    %222 = vector.load %arg8[%c0_77, %c0_78] : memref<8x8xf32, #tpu.memory_space<vmem>>, vector<8x8xf32>
    tpu.vector_store %arg8[%c0_77, %c0_78], %221 {strides = array<i32>} : memref<8x8xf32, #tpu.memory_space<vmem>>, vector<8x8xf32>,
    return
  }
  func.func @transform_0(%arg0: i32, %arg1: i32) -> (i32, i32, i32) {
    %c0_i32 = arith.constant 0 : i32
    %c0_i32_0 = arith.constant 0 : i32
    return %arg1, %arg0, %c0_i32 : i32, i32, i32
  }
  func.func @transform_1(%arg0: i32, %arg1: i32) -> (i32, i32) {
    %c0_i32 = arith.constant 0 : i32
    %c0_i32_0 = arith.constant 0 : i32
    %c0_i32_1 = arith.constant 0 : i32
    return %c0_i32, %c0_i32_0 : i32, i32
  }
  func.func @transform_2(%arg0: i32, %arg1: i32) -> (i32, i32) {
    %c0_i32 = arith.constant 0 : i32
    %c0_i32_0 = arith.constant 0 : i32
    %c0_i32_1 = arith.constant 0 : i32
    return %c0_i32, %c0_i32_0 : i32, i32
  }
  func.func @transform_3(%arg0: i32, %arg1: i32) -> (i32, i32) {
    %c0_i32 = arith.constant 0 : i32
    %c0_i32_0 = arith.constant 0 : i32
    %c0_i32_1 = arith.constant 0 : i32
    return %c0_i32, %c0_i32_0 : i32, i32
  }
  func.func @transform_4(%arg0: i32, %arg1: i32) -> (i32, i32) {
    %c0_i32 = arith.constant 0 : i32
    %c0_i32_0 = arith.constant 0 : i32
    %c0_i32_1 = arith.constant 0 : i32
    return %c0_i32, %c0_i32_0 : i32, i32
  }
  func.func @transform_5(%arg0: i32, %arg1: i32) -> (i32, i32) {
    %c0_i32 = arith.constant 0 : i32
    %c0_i32_0 = arith.constant 0 : i32
    %c0_i32_1 = arith.constant 0 : i32
    return %c0_i32, %c0_i32_0 : i32, i32
  }
  func.func @transform_6(%arg0: i32, %arg1: i32) -> (i32, i32) {
    %c0_i32 = arith.constant 0 : i32
    return %arg1, %arg0 : i32, i32
  }
}

</mosaic_0001>

<bundles_post_ra>
// kernel: tpu_custom_call.1
= control target key start
LH: loop header
LB: loop body
LE: loop exit
PB: predicated region body
PF: predicated region fallthrough
CT: control target
= control target key end

     0   :  { %s1721_s0 = inlined_call_operand.vmem [shape: f32[8,8,1], index: 0, kind: input, shape index: {}]   ;;  %s1722_s1 = inlined_call_operand.vmem [shape: f32[1,128], index: 1, kind: input, shape index: {}]   ;;  %s1723_s2 = inlined_call_operand.vmem [shape: f32[32,128], index: 2, kind: input, shape index: {}]   ;;  %s1724_s3 = inlined_call_operand.vmem [shape: f32[1,128], index: 3, kind: input, shape index: {}]   ;;  %s1725_s4 = inlined_call_operand.vmem [shape: f32[1,32], index: 4, kind: input, shape index: {}]   ;;  %s1726_s5 = inlined_call_operand.<no memory space> [shape: f32[1,1], index: 5, kind: input, shape index: {}]   ;;  %s1727_s6 = inlined_call_operand.hbm [shape: f32[8,8], index: 6, kind: output, shape index: {}]  }
   0x1   :  { %v11_v0 = vstv %s1726_s5 }
   0x2   :  { %12 = vst [vmem:[#allocation6] sm:$0x1] %v11_v0 }
   0x3   :  { %v119_v1 = vld [vmem:[%s1723_s2] sm:$0xff]  ;;  %v120_v2 = vld [vmem:[%s1723_s2 + $0x8] sm:$0xff]  ;;  %v121_v3 = vld [vmem:[%s1723_s2 + $0x10] sm:$0xff]  ;;  %v1447_v4 = vmov 0.0|0.0   ;;  %vm1448_vm0 = vmmov 0   ;;  %v1449_v7 = vmov 0.0  }
   0x4   :  { %1301 = vmatprep.subr.bf16.mxu0 %v1447_v4  ;;  %v1503_v5 = vpack.c.bf16 %v120_v2, %v119_v1  ;;  %v122_v6 = vld [vmem:[%s1723_s2 + $0x18] sm:$0xff]  ;;  %1221 = vmatprep.mubr.msk.f32.mxu0 %vm1448_vm0, %v1449_v7  ;;  %vm30_vm1 = vcmask 261120   ;;  %v1513_v8 = vld [vmem:[%s1721_s0] sm:$0xff]  ;;  %v1450_v9 = vmov 0  }
   0x5   :  { %31 = vst.msk [vmem:[#allocation2] sm:$0xff] %vm30_vm1, %v1449_v7  ;;  %32 = vst.msk [vmem:[#allocation3] sm:$0xff] %vm30_vm1, %v1449_v7  ;;  %1357 = vset.pattern.permute.xlu0 %v1450_v9  ;;  %1307 = vmatprep.subr.bf16.mxu1 %v1447_v4 }
   0x6   :  { %13 = vsyncpa [#allocation8], 0  ;;  %1303 = vmatpush3.bf16.msra.mxu0 %v1503_v5  ;;  %v1521_v10 = vpack.c.bf16 %v122_v6, %v121_v3  ;;  %44 = vperm.xlu0 %1357, %v1513_v8   ;;  %s1451_s2 = smov 32   ;;  %v1544_v13 = vld [vmem:[%s1722_s1] ss:$0 sm:$0xff]  ;;  %s1452_s12 = smov 64  }
   0x7   :  { %1304 = vmatprep.subr.bf16.mxu0 %v1447_v4  ;;  %1309 = vmatpush3.bf16.msra.mxu1 %v1503_v5  ;;  %v1550_v16 = vld [vmem:[%s1724_s3] ss:$0 sm:$0xff]  ;;  %v1559_v33 = vld [vmem:[%s1721_s0 + $0x8] sm:$0xff]  ;;  %v1579_v54 = vld [vmem:[%s1721_s0 + $0x10] sm:$0xff]  ;;  %vm1122_vm2 = vcmask 1041409   ;;  %vm1124_vm3 = vcmask 1042434  }
   0x8   :  { %1310 = vmatprep.subr.bf16.mxu1 %v1447_v4  ;;  %1232 = vmatprep.mubr.msk.f32.mxu1 %vm1448_vm0, %v1449_v7  ;;  %vm1126_vm4 = vcmask 1043459   ;;  %vm1128_vm5 = vcmask 1044484   ;;  %vm1130_vm6 = vcmask 1045509   ;;  %vm1132_vm7 = vcmask 1046534   ;;  %s1454_s26 = smov [#allocation7]  }
   0x9   :  { %1358 = vset.pattern.permute.xlu1 %v1450_v9  ;;  %s1145_s27 = sshll.u32 %s1454_s26, 4  ;;  %vm1134_vm8 = vcmask 1047559   ;;  %vm1137_vm9 = vcmask 64512   ;;  %s1146_s27 = int_to_ptr.vmem [resolvable:$true] %s1145_s27 }
   0xa   :  { %1306 = vmatpush3.bf16.msra.mxu0 %v1521_v10  ;;  %s1423_s28 = scalar_lea.vmem %s1146_s27, 128  ;;  %p1428_p1 = scmp.lt.s32.totalorder %s1146_s27, %s1146_s27 }
   0xb   :  { %1312 = vmatpush3.bf16.msra.mxu1 %v1521_v10  ;;  %1313 = vmatprep.subr.bf16.mxu0 %v1447_v4  ;;  %p1424_p0 = scmp.ne.s32.totalorder %s1146_s27, %s1423_s28  ;;  %p1429_p2 = scmp.lt.s32.totalorder %s1423_s28, %s1423_s28 }
   0xc   :  { %v123_v11 = vld [vmem:[#allocation2] sm:$0xff]  ;;  %v124_v12 = vld [vmem:[#allocation3] sm:$0xff]  ;;  %1319 = vmatprep.subr.bf16.mxu1 %v1447_v4 }
   0xd   :  { %1222 = vmatmul.mubr.msk.f32.vlgmr.msra.gmra.mrb[0].mxu0 %vm30_vm1, %v123_v11  ;;  %209 = vrot.lane.b32.xlu1 %v124_v12, %s1451_s2  ;;  %p1430_p3 = por %p1429_p2, %p1428_p1 }
   0xe   :  { %1315 = vmatpush3.bf16.msra.mxu0 %v1503_v5  ;;  %1243 = vmatprep.mubr.msk.f32.mxu0 %vm1448_vm0, %v1449_v7 }
   0xf   :  { %1316 = vmatprep.subr.bf16.mxu0 %v1447_v4  ;;  %p1431_p4 = pnand %p1430_p3, %p1424_p0 }
  0x12   :  { %1318 = vmatpush3.bf16.msra.mxu0 %v1521_v10 }
  0x13   :  { %1325 = vmatprep.subr.bf16.mxu0 %v1447_v4 }
  0x7f   :  { %v210_v28 = vpop.permute.xlu1 %209 }
  0x85   :  { %v45_v14 = vpop.permute.xlu0 %44 }
  0x86   :  { %v88_v15 = vmul.f32 %v1544_v13, %v45_v14 }
  0x88   :  { %v103_v17 = vadd.f32 %v1550_v16, %v88_v15 }
  0xe0   :  { %v196_v18 = vpop.f32.mrb[0].mxu0 }
  0xe1   :  { %v200_v19 = vadd.f32 %v196_v18, %v103_v17  ;;  %v1223_v20 = vpop.f32.mrb[1].mxu0  ;;  %v1599_v18 = vld [vmem:[%s1721_s0 + $0x18] sm:$0xff] }
  0xe3   :  { %1359 = vtanh.f32 %v200_v19  ;;  %v1156_v22 = vmul.f32 -1.442695, %v200_v19 }
  0xe5   :  { %1361 = vpow2.f32 %v1156_v22 }
  0xed   :  { %v1360_v21 = vpop.eup %1359 }
  0xee   :  { %214 = vrot.lane.b32.xlu0 %v1360_v21, %s1452_s12 }
  0xef   :  { %v1362_v23 = vpop.eup %1361 }
  0xf0   :  { %v204_v24 = vadd.f32 1.0, %v1362_v23 }
  0xf2   :  { %1363 = vrcp.f32 %v204_v24 }
  0xfc   :  { %v1364_v25 = vpop.eup %1363 }
  0xfd   :  { %v212_v29 = vmul.f32 %v1364_v25, %v210_v28 }
 0x160   :  { %v215_v26 = vpop.permute.xlu0 %214 }
 0x161   :  { %v217_v27 = vmul.f32 %v1364_v25, %v215_v26 }
 0x163   :  { %219 = vrot.lane.b32.xlu1 %v217_v27, %s1451_s2 }
 0x1d5   :  { %v220_v30 = vpop.permute.xlu1 %219 }
 0x1d6   :  { %v222_v31 = vadd.f32 %v220_v30, %v212_v29 }
 0x1d8   :  { %1365 = vtanh.f32 %v222_v31 }
 0x1e2   :  { %v1366_v32 = vpop.eup %1365 }
 0x1e3   :  { %225 = vrot.lane.b32.xlu0 %v1366_v32, %s1452_s12 }
 0x1e7   :  { %49 = vperm.xlu0 %1357, %v1559_v33  }
 0x255   :  { %v226_v34 = vpop.permute.xlu0 %225 }
 0x256   :  { %v228_v35 = vmul.f32 %v1364_v25, %v226_v34 }
 0x258   :  { %230 = vrot.lane.b32.xlu1 %v228_v35, %s1451_s2 }
 0x266   :  { %v50_v37 = vpop.permute.xlu0 %49 }
 0x267   :  { %v89_v38 = vmul.f32 %v1544_v13, %v50_v37 }
 0x269   :  { %v104_v39 = vadd.f32 %v1550_v16, %v89_v38 }
 0x2ca   :  { %v231_v36 = vpop.permute.xlu1 %230 }
 0x2cb   :  { %233 = vst.msk [vmem:[#allocation5] sm:$0xff] %vm30_vm1, %v231_v36  ;;  %1233 = vmatmul.mubr.msk.f32.vlgmr.msra.gmra.mrb[0].mxu1 %vm30_vm1, %v231_v36 }
 0x2cc   :  { %1321 = vmatpush3.bf16.msra.mxu1 %v1503_v5  ;;  %1254 = vmatprep.mubr.msk.f32.mxu1 %vm1448_vm0, %v1449_v7 }
 0x2cd   :  { %1322 = vmatprep.subr.bf16.mxu1 %v1447_v4 }
 0x2d0   :  { %1324 = vmatpush3.bf16.msra.mxu1 %v1521_v10 }
 0x2d1   :  { %1331 = vmatprep.subr.bf16.mxu1 %v1447_v4 }
 0x39e   :  { %v304_v40 = vpop.f32.mrb[0].mxu1 }
 0x39f   :  { %v308_v41 = vadd.f32 %v304_v40, %v104_v39  ;;  %v1234_v42 = vpop.f32.mrb[1].mxu1  ;;  %v1619_v40 = vld [vmem:[%s1721_s0 + $0x20] sm:$0xff] }
 0x3a1   :  { %1367 = vtanh.f32 %v308_v41  ;;  %v1158_v44 = vmul.f32 -1.442695, %v308_v41 }
 0x3a3   :  { %1369 = vpow2.f32 %v1158_v44 }
 0x3ab   :  { %v1368_v43 = vpop.eup %1367 }
 0x3ac   :  { %318 = vrot.lane.b32.xlu1 %v1368_v43, %s1452_s12 }
 0x3ad   :  { %v1370_v45 = vpop.eup %1369 }
 0x3ae   :  { %v312_v46 = vadd.f32 1.0, %v1370_v45 }
 0x3b0   :  { %1371 = vrcp.f32 %v312_v46 }
 0x3ba   :  { %v1372_v47 = vpop.eup %1371 }
 0x3bb   :  { %v316_v50 = vmul.f32 %v1372_v47, %v222_v31 }
 0x41e   :  { %v319_v48 = vpop.permute.xlu1 %318 }
 0x41f   :  { %v321_v49 = vmul.f32 %v1372_v47, %v319_v48 }
 0x421   :  { %323 = vrot.lane.b32.xlu0 %v321_v49, %s1451_s2 }
 0x493   :  { %v324_v51 = vpop.permute.xlu0 %323 }
 0x494   :  { %v326_v52 = vadd.f32 %v324_v51, %v316_v50 }
 0x496   :  { %1373 = vtanh.f32 %v326_v52 }
 0x4a0   :  { %v1374_v53 = vpop.eup %1373 }
 0x4a1   :  { %329 = vrot.lane.b32.xlu1 %v1374_v53, %s1452_s12 }
 0x4a5   :  { %54 = vperm.xlu1 %1358, %v1579_v54  }
 0x513   :  { %v330_v55 = vpop.permute.xlu1 %329 }
 0x514   :  { %v332_v56 = vmul.f32 %v1372_v47, %v330_v55 }
 0x516   :  { %334 = vrot.lane.b32.xlu0 %v332_v56, %s1451_s2 }
 0x524   :  { %v55_v58 = vpop.permute.xlu1 %54 }
 0x525   :  { %v90_v59 = vmul.f32 %v1544_v13, %v55_v58 }
 0x527   :  { %v105_v60 = vadd.f32 %v1550_v16, %v90_v59 }
 0x588   :  { %v335_v57 = vpop.permute.xlu0 %334 }
 0x589   :  { %338 = vst.msk [vmem:[#allocation5 + $0x8] sm:$0xff] %vm30_vm1, %v335_v57  ;;  %1244 = vmatmul.mubr.msk.f32.vlgmr.msra.gmra.mrb[2].mxu0 %vm30_vm1, %v335_v57 }
 0x58a   :  { %1327 = vmatpush3.bf16.msra.mxu0 %v1503_v5  ;;  %1265 = vmatprep.mubr.msk.f32.mxu0 %vm1448_vm0, %v1449_v7 }
 0x58b   :  { %1328 = vmatprep.subr.bf16.mxu0 %v1447_v4 }
 0x58e   :  { %1330 = vmatpush3.bf16.msra.mxu0 %v1521_v10 }
 0x58f   :  { %1337 = vmatprep.subr.bf16.mxu0 %v1447_v4 }
 0x65c   :  { %v409_v61 = vpop.f32.mrb[2].mxu0 }
 0x65d   :  { %v413_v62 = vadd.f32 %v409_v61, %v105_v60  ;;  %v1245_v63 = vpop.f32.mrb[3].mxu0 }
 0x65f   :  { %1375 = vtanh.f32 %v413_v62  ;;  %v1160_v1 = vmul.f32 -1.442695, %v413_v62  ;;  %v1638_v62 = vld [vmem:[%s1721_s0 + $0x28] sm:$0xff] }
 0x661   :  { %1377 = vpow2.f32 %v1160_v1 }
 0x669   :  { %v1376_v0 = vpop.eup %1375 }
 0x66a   :  { %423 = vrot.lane.b32.xlu0 %v1376_v0, %s1452_s12 }
 0x66b   :  { %v1378_v2 = vpop.eup %1377 }
 0x66c   :  { %v417_v3 = vadd.f32 1.0, %v1378_v2 }
 0x66e   :  { %1379 = vrcp.f32 %v417_v3 }
 0x678   :  { %v1380_v6 = vpop.eup %1379 }
 0x679   :  { %v421_v12 = vmul.f32 %v1380_v6, %v326_v52 }
 0x6dc   :  { %v424_v9 = vpop.permute.xlu0 %423 }
 0x6dd   :  { %v426_v11 = vmul.f32 %v1380_v6, %v424_v9 }
 0x6df   :  { %428 = vrot.lane.b32.xlu1 %v426_v11, %s1451_s2 }
 0x751   :  { %v429_v14 = vpop.permute.xlu1 %428 }
 0x752   :  { %v431_v15 = vadd.f32 %v429_v14, %v421_v12 }
 0x754   :  { %1381 = vtanh.f32 %v431_v15 }
 0x75e   :  { %v1382_v17 = vpop.eup %1381 }
 0x75f   :  { %434 = vrot.lane.b32.xlu0 %v1382_v17, %s1452_s12 }
 0x763   :  { %59 = vperm.xlu0 %1357, %v1599_v18  }
 0x7d1   :  { %v435_v19 = vpop.permute.xlu0 %434 }
 0x7d2   :  { %v437_v20 = vmul.f32 %v1380_v6, %v435_v19 }
 0x7d4   :  { %439 = vrot.lane.b32.xlu1 %v437_v20, %s1451_s2 }
 0x7e2   :  { %v60_v22 = vpop.permute.xlu0 %59 }
 0x7e3   :  { %v91_v23 = vmul.f32 %v1544_v13, %v60_v22 }
 0x7e5   :  { %v106_v24 = vadd.f32 %v1550_v16, %v91_v23  ;;  %v1657_v23 = vld [vmem:[%s1721_s0 + $0x30] sm:$0xff] }
 0x846   :  { %v440_v21 = vpop.permute.xlu1 %439 }
 0x847   :  { %443 = vst.msk [vmem:[#allocation5 + $0x10] sm:$0xff] %vm30_vm1, %v440_v21  ;;  %1255 = vmatmul.mubr.msk.f32.vlgmr.msra.gmra.mrb[2].mxu1 %vm30_vm1, %v440_v21 }
 0x848   :  { %1333 = vmatpush3.bf16.msra.mxu1 %v1503_v5  ;;  %1276 = vmatprep.mubr.msk.f32.mxu1 %vm1448_vm0, %v1449_v7 }
 0x849   :  { %1334 = vmatprep.subr.bf16.mxu1 %v1447_v4 }
 0x84c   :  { %1336 = vmatpush3.bf16.msra.mxu1 %v1521_v10 }
 0x84d   :  { %1343 = vmatprep.subr.bf16.mxu1 %v1447_v4 }
 0x91a   :  { %v514_v25 = vpop.f32.mrb[2].mxu1 }
 0x91b   :  { %v518_v26 = vadd.f32 %v514_v25, %v106_v24  ;;  %v1256_v27 = vpop.f32.mrb[3].mxu1 }
 0x91d   :  { %1383 = vtanh.f32 %v518_v26  ;;  %v1162_v29 = vmul.f32 -1.442695, %v518_v26 }
 0x91f   :  { %1385 = vpow2.f32 %v1162_v29 }
 0x927   :  { %v1384_v28 = vpop.eup %1383 }
 0x928   :  { %528 = vrot.lane.b32.xlu1 %v1384_v28, %s1452_s12 }
 0x929   :  { %v1386_v30 = vpop.eup %1385 }
 0x92a   :  { %v522_v31 = vadd.f32 1.0, %v1386_v30 }
 0x92c   :  { %1387 = vrcp.f32 %v522_v31 }
 0x936   :  { %v1388_v32 = vpop.eup %1387 }
 0x937   :  { %v526_v36 = vmul.f32 %v1388_v32, %v431_v15 }
 0x99a   :  { %v529_v34 = vpop.permute.xlu1 %528 }
 0x99b   :  { %v531_v35 = vmul.f32 %v1388_v32, %v529_v34 }
 0x99d   :  { %533 = vrot.lane.b32.xlu0 %v531_v35, %s1451_s2 }
 0xa0f   :  { %v534_v37 = vpop.permute.xlu0 %533 }
 0xa10   :  { %v536_v38 = vadd.f32 %v534_v37, %v526_v36 }
 0xa12   :  { %1389 = vtanh.f32 %v536_v38 }
 0xa1c   :  { %v1390_v39 = vpop.eup %1389 }
 0xa1d   :  { %539 = vrot.lane.b32.xlu1 %v1390_v39, %s1452_s12 }
 0xa21   :  { %64 = vperm.xlu1 %1358, %v1619_v40  }
 0xa8f   :  { %v540_v41 = vpop.permute.xlu1 %539 }
 0xa90   :  { %v542_v42 = vmul.f32 %v1388_v32, %v540_v41 }
 0xa92   :  { %544 = vrot.lane.b32.xlu0 %v542_v42, %s1451_s2 }
 0xaa0   :  { %v65_v44 = vpop.permute.xlu1 %64 }
 0xaa1   :  { %v92_v45 = vmul.f32 %v1544_v13, %v65_v44 }
 0xaa3   :  { %v107_v46 = vadd.f32 %v1550_v16, %v92_v45 }
 0xb04   :  { %v545_v43 = vpop.permute.xlu0 %544 }
 0xb05   :  { %548 = vst.msk [vmem:[#allocation5 + $0x18] sm:$0xff] %vm30_vm1, %v545_v43  ;;  %1266 = vmatmul.mubr.msk.f32.vlgmr.msra.gmra.mrb[4].mxu0 %vm30_vm1, %v545_v43 }
 0xb06   :  { %1339 = vmatpush3.bf16.msra.mxu0 %v1503_v5  ;;  %1287 = vmatprep.mubr.msk.f32.mxu0 %vm1448_vm0, %v1449_v7 }
 0xb07   :  { %1340 = vmatprep.subr.bf16.mxu0 %v1447_v4 }
 0xb0a   :  { %1342 = vmatpush3.bf16.msra.mxu0 %v1521_v10 }
 0xbd8   :  { %v619_v47 = vpop.f32.mrb[4].mxu0 }
 0xbd9   :  { %v623_v48 = vadd.f32 %v619_v47, %v107_v46  ;;  %v1267_v49 = vpop.f32.mrb[5].mxu0  ;;  %v1671_v46 = vld [vmem:[%s1721_s0 + $0x38] sm:$0xff] }
 0xbdb   :  { %1391 = vtanh.f32 %v623_v48  ;;  %v1164_v51 = vmul.f32 -1.442695, %v623_v48 }
 0xbdd   :  { %1393 = vpow2.f32 %v1164_v51 }
 0xbe5   :  { %v1392_v50 = vpop.eup %1391 }
 0xbe6   :  { %633 = vrot.lane.b32.xlu0 %v1392_v50, %s1452_s12 }
 0xbe7   :  { %v1394_v52 = vpop.eup %1393 }
 0xbe8   :  { %v627_v53 = vadd.f32 1.0, %v1394_v52 }
 0xbea   :  { %1395 = vrcp.f32 %v627_v53 }
 0xbf4   :  { %v1396_v55 = vpop.eup %1395 }
 0xbf5   :  { %v631_v58 = vmul.f32 %v1396_v55, %v536_v38 }
 0xc58   :  { %v634_v56 = vpop.permute.xlu0 %633 }
 0xc59   :  { %v636_v57 = vmul.f32 %v1396_v55, %v634_v56 }
 0xc5b   :  { %638 = vrot.lane.b32.xlu1 %v636_v57, %s1451_s2 }
 0xccd   :  { %v639_v59 = vpop.permute.xlu1 %638 }
 0xcce   :  { %v641_v60 = vadd.f32 %v639_v59, %v631_v58 }
 0xcd0   :  { %1397 = vtanh.f32 %v641_v60 }
 0xcda   :  { %v1398_v61 = vpop.eup %1397 }
 0xcdb   :  { %644 = vrot.lane.b32.xlu0 %v1398_v61, %s1452_s12 }
 0xcdf   :  { %69 = vperm.xlu0 %1357, %v1638_v62  }
 0xd4d   :  { %v645_v63 = vpop.permute.xlu0 %644 }
 0xd4e   :  { %v647_v0 = vmul.f32 %v1396_v55, %v645_v63 }
 0xd50   :  { %649 = vrot.lane.b32.xlu1 %v647_v0, %s1451_s2 }
 0xd5e   :  { %v70_v2 = vpop.permute.xlu0 %69 }
 0xd5f   :  { %v93_v3 = vmul.f32 %v1544_v13, %v70_v2 }
 0xd61   :  { %v108_v6 = vadd.f32 %v1550_v16, %v93_v3  ;;  %v975_v3 = vld [vmem:[#allocation5] sm:$0xff] }
 0xdc2   :  { %v650_v1 = vpop.permute.xlu1 %649 }
 0xdc3   :  { %653 = vst.msk [vmem:[#allocation5 + $0x20] sm:$0xff] %vm30_vm1, %v650_v1  ;;  %1277 = vmatmul.mubr.msk.f32.vlgmr.msra.gmra.mrb[4].mxu1 %vm30_vm1, %v650_v1 }
 0xdc4   :  { %1345 = vmatpush3.bf16.msra.mxu1 %v1503_v5  ;;  %1298 = vmatprep.mubr.msk.f32.mxu1 %vm1448_vm0, %v1449_v7 }
 0xdc5   :  { %1346 = vmatprep.subr.bf16.mxu1 %v1447_v4 }
 0xdc8   :  { %1348 = vmatpush3.bf16.msra.mxu1 %v1521_v10 }
 0xe96   :  { %v724_v9 = vpop.f32.mrb[4].mxu1 }
 0xe97   :  { %v728_v11 = vadd.f32 %v724_v9, %v108_v6  ;;  %v1278_v12 = vpop.f32.mrb[5].mxu1  ;;  %v1171_v6 = vld [vmem:[%s1725_s4] ss:$0 sm:$0xff]  ;;  %s1453_s4 = smov 96  }
 0xe98   :  { %v990_v9 = vmul.f32 %v1171_v6, %v975_v3 }
 0xe99   :  { %1399 = vtanh.f32 %v728_v11  ;;  %v1166_v5 = vmul.f32 -1.442695, %v728_v11  ;;  %v978_v11 = vld [vmem:[#allocation5 + $0x18] sm:$0xff] }
 0xe9a   :  { %v998_v12 = vsel %vm30_vm1, %v990_v9, 0.0 }
 0xe9b   :  { %1401 = vpow2.f32 %v1166_v5 }
 0xea3   :  { %v1400_v14 = vpop.eup %1399 }
 0xea4   :  { %738 = vrot.lane.b32.xlu1 %v1400_v14, %s1452_s12  ;;  %v993_v14 = vmul.f32 %v1171_v6, %v978_v11 }
 0xea5   :  { %v1402_v15 = vpop.eup %1401 }
 0xea6   :  { %v732_v7 = vadd.f32 1.0, %v1402_v15  ;;  %v1007_v15 = vsel %vm30_vm1, %v993_v14, 0.0 }
 0xea8   :  { %1403 = vrcp.f32 %v732_v7 }
 0xeb2   :  { %v1404_v4 = vpop.eup %1403 }
 0xeb3   :  { %v736_v19 = vmul.f32 %v1404_v4, %v641_v60 }
 0xf16   :  { %v739_v17 = vpop.permute.xlu1 %738 }
 0xf17   :  { %v741_v10 = vmul.f32 %v1404_v4, %v739_v17 }
 0xf19   :  { %743 = vrot.lane.b32.xlu0 %v741_v10, %s1451_s2 }
 0xf8b   :  { %v744_v20 = vpop.permute.xlu0 %743 }
 0xf8c   :  { %v746_v21 = vadd.f32 %v744_v20, %v736_v19  ;;  %v976_v19 = vld [vmem:[#allocation5 + $0x8] sm:$0xff] }
 0xf8d   :  { %v991_v20 = vmul.f32 %v1171_v6, %v976_v19 }
 0xf8e   :  { %1405 = vtanh.f32 %v746_v21 }
 0xf98   :  { %v1406_v22 = vpop.eup %1405 }
 0xf99   :  { %749 = vrot.lane.b32.xlu1 %v1406_v22, %s1452_s12  ;;  %v1001_v22 = vsel %vm30_vm1, %v991_v20, 0.0 }
 0xf9d   :  { %74 = vperm.xlu1 %1358, %v1657_v23  }
0x100b   :  { %v750_v24 = vpop.permute.xlu1 %749 }
0x100c   :  { %v752_v25 = vmul.f32 %v1404_v4, %v750_v24 }
0x100e   :  { %754 = vrot.lane.b32.xlu0 %v752_v25, %s1451_s2  ;;  %v979_v25 = vld [vmem:[#allocation5 + $0x20] sm:$0xff] }
0x101c   :  { %v75_v27 = vpop.permute.xlu1 %74 }
0x101d   :  { %v94_v28 = vmul.f32 %v1544_v13, %v75_v27  ;;  %v994_v27 = vmul.f32 %v1171_v6, %v979_v25 }
0x101f   :  { %v109_v29 = vadd.f32 %v1550_v16, %v94_v28 }
0x1080   :  { %v755_v26 = vpop.permute.xlu0 %754 }
0x1081   :  { %758 = vst.msk [vmem:[#allocation5 + $0x28] sm:$0xff] %vm30_vm1, %v755_v26  ;;  %1288 = vmatmul.mubr.msk.f32.vlgmr.msra.gmra.mrb[6].mxu0 %vm30_vm1, %v755_v26 }
0x1088   :  { %v980_v5 = vld [vmem:[#allocation5 + $0x28] sm:$0xff] }
0x1089   :  { %v995_v7 = vmul.f32 %v1171_v6, %v980_v5 }
0x108b   :  { %v1013_v4 = vsel %vm30_vm1, %v995_v7, 0.0 }
0x1154   :  { %v829_v30 = vpop.f32.mrb[6].mxu0 }
0x1155   :  { %v833_v31 = vadd.f32 %v829_v30, %v109_v29  ;;  %v1289_v32 = vpop.f32.mrb[7].mxu0  ;;  %v1010_v29 = vsel %vm30_vm1, %v994_v27, 0.0 }
0x1156   :  { %v1172_v32 = vld [vmem:[#allocation6] ss:$0 sm:$0xff] }
0x1157   :  { %1407 = vtanh.f32 %v833_v31  ;;  %v1168_v35 = vmul.f32 -1.442695, %v833_v31 }
0x1159   :  { %1409 = vpow2.f32 %v1168_v35 }
0x1161   :  { %v1408_v34 = vpop.eup %1407 }
0x1162   :  { %843 = vrot.lane.b32.xlu0 %v1408_v34, %s1452_s12 }
0x1163   :  { %v1410_v36 = vpop.eup %1409 }
0x1164   :  { %v837_v37 = vadd.f32 1.0, %v1410_v36 }
0x1166   :  { %1411 = vrcp.f32 %v837_v37 }
0x1170   :  { %v1412_v38 = vpop.eup %1411 }
0x1171   :  { %v841_v42 = vmul.f32 %v1412_v38, %v746_v21  ;;  %v977_v21 = vld [vmem:[#allocation5 + $0x10] sm:$0xff] }
0x1172   :  { %v992_v24 = vmul.f32 %v1171_v6, %v977_v21 }
0x1174   :  { %v1004_v26 = vsel %vm30_vm1, %v992_v24, 0.0 }
0x11d4   :  { %v844_v39 = vpop.permute.xlu0 %843 }
0x11d5   :  { %v846_v41 = vmul.f32 %v1412_v38, %v844_v39 }
0x11d7   :  { %848 = vrot.lane.b32.xlu1 %v846_v41, %s1451_s2 }
0x1249   :  { %v849_v43 = vpop.permute.xlu1 %848 }
0x124a   :  { %v851_v44 = vadd.f32 %v849_v43, %v841_v42 }
0x124c   :  { %1413 = vtanh.f32 %v851_v44 }
0x1256   :  { %v1414_v45 = vpop.eup %1413 }
0x1257   :  { %854 = vrot.lane.b32.xlu0 %v1414_v45, %s1452_s12 }
0x125b   :  { %79 = vperm.xlu0 %1357, %v1671_v46  }
0x12c9   :  { %v855_v47 = vpop.permute.xlu0 %854 }
0x12ca   :  { %v857_v48 = vmul.f32 %v1412_v38, %v855_v47 }
0x12cc   :  { %859 = vrot.lane.b32.xlu1 %v857_v48, %s1451_s2 }
0x12da   :  { %v80_v50 = vpop.permute.xlu0 %79 }
0x12db   :  { %v95_v51 = vmul.f32 %v1544_v13, %v80_v50 }
0x12dd   :  { %v110_v52 = vadd.f32 %v1550_v16, %v95_v51 }
0x133e   :  { %v860_v49 = vpop.permute.xlu1 %859 }
0x133f   :  { %863 = vst.msk [vmem:[#allocation5 + $0x30] sm:$0xff] %vm30_vm1, %v860_v49  ;;  %1299 = vmatmul.mubr.msk.f32.vlgmr.msra.gmra.mrb[6].mxu1 %vm30_vm1, %v860_v49 }
0x1346   :  { %v981_v28 = vld [vmem:[#allocation5 + $0x30] sm:$0xff] }
0x1347   :  { %v996_v30 = vmul.f32 %v1171_v6, %v981_v28 }
0x1349   :  { %v1016_v31 = vsel %vm30_vm1, %v996_v30, 0.0 }
0x1412   :  { %v934_v53 = vpop.f32.mrb[6].mxu1 }
0x1413   :  { %v938_v55 = vadd.f32 %v934_v53, %v110_v52  ;;  %v1300_v56 = vpop.f32.mrb[7].mxu1 }
0x1415   :  { %1415 = vtanh.f32 %v938_v55  ;;  %v1170_v58 = vmul.f32 -1.442695, %v938_v55 }
0x1417   :  { %1417 = vpow2.f32 %v1170_v58 }
0x141f   :  { %v1416_v57 = vpop.eup %1415 }
0x1420   :  { %948 = vrot.lane.b32.xlu1 %v1416_v57, %s1452_s12 }
0x1421   :  { %v1418_v59 = vpop.eup %1417 }
0x1422   :  { %v942_v60 = vadd.f32 1.0, %v1418_v59 }
0x1424   :  { %1419 = vrcp.f32 %v942_v60 }
0x142e   :  { %v1420_v61 = vpop.eup %1419 }
0x142f   :  { %v946_v13 = vmul.f32 %v1420_v61, %v851_v44 }
0x1492   :  { %v949_v63 = vpop.permute.xlu1 %948 }
0x1493   :  { %v951_v0 = vmul.f32 %v1420_v61, %v949_v63  ;;  %v1088_v63 = vlaneseq }
0x1495   :  { %953 = vrot.lane.b32.xlu0 %v951_v0, %s1451_s2  ;;  %v1089_v0 = vand.u32 127, %v1088_v63 }
0x1507   :  { %v954_v1 = vpop.permute.xlu0 %953 }
0x1508   :  { %v1681_v16 = vadd.f32 %v954_v1, %v946_v13  ;;  %v1091_v13 = vshrl.u32 %v1088_v63, 7 }
0x150a   :  { %1421 = vtanh.f32 %v1681_v16 }
0x1514   :  { %v1422_v2 = vpop.eup %1421 }
0x1515   :  { %959 = vrot.lane.b32.xlu1 %v1422_v2, %s1452_s12 }
0x1539   :  { %999 = vadd.xlane.f32.xlu1 %v998_v12 }
0x153d   :  { %1008 = vadd.xlane.f32.xlu1 %v1007_v15 }
0x1541   :  { %1014 = vadd.xlane.f32.xlu1 %v1013_v4 }
0x1587   :  { %v960_v17 = vpop.permute.xlu1 %959 }
0x1588   :  { %v962_v10 = vmul.f32 %v1420_v61, %v960_v17 }
0x158a   :  { %964 = vrot.lane.b32.xlu0 %v962_v10, %s1451_s2 }
0x15a9   :  { %1002 = vadd.xlane.f32.xlu0 %v1001_v22 }
0x15ad   :  { %1005 = vadd.xlane.f32.xlu0 %v1004_v26 }
0x15b1   :  { %1011 = vadd.xlane.f32.xlu0 %v1010_v29 }
0x15b5   :  { %1017 = vadd.xlane.f32.xlu0 %v1016_v31 }
0x15c6   :  { %v1000_v43 = vpop.xlane.xlu1 %999 }
0x15ca   :  { %v1009_v52 = vpop.xlane.xlu1 %1008 }
0x15cb   :  { %1029 = vperm.xlu0 %1357, %v1172_v32  }
0x15ce   :  { %v1015_v58 = vpop.xlane.xlu1 %1014 }
0x15fc   :  { %v965_v34 = vpop.permute.xlu0 %964 }
0x15fd   :  { %968 = vst.msk [vmem:[#allocation5 + $0x38] sm:$0xff] %vm30_vm1, %v965_v34  ;;  %969 = vst.msk [vmem:[#allocation2] sm:$0xff] %vm30_vm1, %v965_v34 }
0x1604   :  { %v982_v35 = vld [vmem:[#allocation5 + $0x38] sm:$0xff] }
0x1605   :  { %v997_v36 = vmul.f32 %v1171_v6, %v982_v35 }
0x1607   :  { %v1019_v37 = vsel %vm30_vm1, %v997_v36, 0.0 }
0x1608   :  { %1020 = vadd.xlane.f32.xlu1 %v1019_v37 }
0x1636   :  { %v1003_v38 = vpop.xlane.xlu0 %1002 }
0x163a   :  { %v1006_v39 = vpop.xlane.xlu0 %1005 }
0x163e   :  { %v1012_v41 = vpop.xlane.xlu0 %1011 }
0x1642   :  { %v1018_v42 = vpop.xlane.xlu0 %1017 }
0x164a   :  { %v1030_v44 = vpop.permute.xlu0 %1029 }
0x164b   :  { %v1034_v45 = vadd.f32 %v1030_v44, %v1006_v39  ;;  %v1032_v47 = vadd.f32 %v1030_v44, %v1000_v43  ;;  %v1036_v50 = vadd.f32 %v1030_v44, %v1012_v41  ;;  %v1033_v51 = vadd.f32 %v1030_v44, %v1003_v38 }
0x164c   :  { %v1038_v56 = vadd.f32 %v1030_v44, %v1018_v42  ;;  %v1035_v57 = vadd.f32 %v1030_v44, %v1009_v52  ;;  %v1037_v60 = vadd.f32 %v1030_v44, %v1015_v58 }
0x164d   :  { %v1050_v48 = vadd.f32 %v1034_v45, %v1579_v54  ;;  %v1048_v49 = vadd.f32 %v1032_v47, %v1513_v8  ;;  %v1052_v53 = vadd.f32 %v1036_v50, %v1619_v40  ;;  %v1049_v55 = vadd.f32 %v1033_v51, %v1559_v33 }
0x164e   :  { %v1054_v59 = vadd.f32 %v1038_v56, %v1657_v23  ;;  %v1051_v54 = vadd.f32 %v1035_v57, %v1599_v18  ;;  %v1053_v8 = vadd.f32 %v1037_v60, %v1638_v62  ;;  %v1092_v18 = vsub.s32 %v1089_v0, %v1091_v13 }
0x164f   :  { %1071 = vperm.xlu0 %1357, %v1050_v48   ;;  %1065 = vperm.xlu1 %1358, %v1048_v49  }
0x1653   :  { %1077 = vperm.xlu0 %1357, %v1052_v53   ;;  %1068 = vperm.xlu1 %1358, %v1049_v55  }
0x1657   :  { %1083 = vperm.xlu0 %1357, %v1054_v59   ;;  %1074 = vperm.xlu1 %1358, %v1051_v54  }
0x165b   :  { %971 = vrot.lane.b32.xlu0 %v1681_v16, %s1453_s4  ;;  %1080 = vperm.xlu1 %1358, %v1053_v8  }
0x1695   :  { %v1021_v40 = vpop.xlane.xlu1 %1020 }
0x1696   :  { %v1039_v33 = vadd.f32 %v1030_v44, %v1021_v40 }
0x1698   :  { %v1055_v61 = vadd.f32 %v1039_v33, %v1671_v46 }
0x169a   :  { %1086 = vperm.xlu1 %1358, %v1055_v61  }
0x16ce   :  { %v1072_v23 = vpop.permute.xlu0 %1071  ;;  %v1066_v1 = vpop.permute.xlu1 %1065 }
0x16cf   :  { %v1093_v6 = vrot.slane %v1066_v1, %v1092_v18  ;;  %v1101_v16 = vrot.slane %v1072_v23, %v1092_v18 }
0x16d2   :  { %v1078_v2 = vpop.permute.xlu0 %1077  ;;  %v1069_v3 = vpop.permute.xlu1 %1068 }
0x16d3   :  { %v1097_v62 = vrot.slane %v1069_v3, %v1092_v18  ;;  %v1109_v46 = vrot.slane %v1078_v2, %v1092_v18 }
0x16d5   :  { %v1123_v9 = vsel %vm1122_vm2, %v1097_v62, %v1093_v6 }
0x16d6   :  { %v1084_v11 = vpop.permute.xlu0 %1083  ;;  %v1075_v12 = vpop.permute.xlu1 %1074  ;;  %v1125_v5 = vsel %vm1124_vm3, %v1101_v16, %v1123_v9 }
0x16d7   :  { %v1105_v14 = vrot.slane %v1075_v12, %v1092_v18  ;;  %v1117_v19 = vrot.slane %v1084_v11, %v1092_v18 }
0x16d9   :  { %v1127_v15 = vsel %vm1126_vm4, %v1105_v14, %v1125_v5 }
0x16da   :  { %v972_v7 = vpop.permute.xlu0 %971  ;;  %v1129_v4 = vsel %vm1128_vm5, %v1109_v46, %v1127_v15  ;;  %v1081_v17 = vpop.permute.xlu1 %1080 }
0x16db   :  { %974 = vst.msk [vmem:[#allocation3] sm:$0xff] %vm30_vm1, %v972_v7  ;;  %v1113_v10 = vrot.slane %v1081_v17, %v1092_v18 }
0x16dd   :  { %v1131_v20 = vsel %vm1130_vm6, %v1113_v10, %v1129_v4 }
0x16de   :  { %v1133_v21 = vsel %vm1132_vm7, %v1117_v19, %v1131_v20 }
0x1719   :  { %v1087_v22 = vpop.permute.xlu1 %1086 }
0x171a   :  { %v1121_v24 = vrot.slane %v1087_v22, %v1092_v18 }
0x171c   :  { %v1135_v25 = vsel %vm1134_vm8, %v1121_v24, %v1133_v21 }
0x171d   :  { %1138 = vst.msk [vmem:[#allocation7] sm:$0xff] %vm1137_vm9, %v1135_v25 }
0x171e   :  { %1434 = shalt.err (!%p1431_p4)
}
0x171f   :  { %s1435_s30 = scalar_lea.hbm %s1727_s6, 128 }
0x1720   :  { %p1436_p5 = scmp.ne.s32.totalorder %s1727_s6, %s1435_s30  ;;  %p1439_p6 = scmp.lt.u32.totalorder %s1435_s30, %s1727_s6 }
0x1722   :  { %p1441_p7 = pnand %p1439_p6, %p1436_p5 }
0x1724   :  { %1444 = shalt.err (!%p1441_p7)
}
0x1725   :  { %1148 = dma.vmem_to_hbm [thread:$0]  %s1146_s27, 128, %s1727_s6, [#allocation8]  }
0x1726   :  { %1445 = dma.done.wait [#allocation8], 128  }
0x1727   :  { %1446 = vsyncadd [#allocation8], 4294967168 }
0x1728   :  { %1152 = vsyncpa [#allocation8], 1 }

</bundles_post_ra>
